<compile_context>
chip_gen: v5e
topology: v5e:2x2
jax: 0.10.0
libtpu: 0.0.40
codegen_flags: <defaults>
</compile_context>

<pallas_src>
import jax
import jax.numpy as jnp
from jax.experimental import pallas as pl
from jax.experimental.pallas import tpu as pltpu


def _denorm_kernel(x_ref, m_ref, s_ref, o_ref):
    # x_ref/o_ref: (R_tile, L) VMEM tiles.  m_ref/s_ref: (R_tile, 1) columns
    # that broadcast along the lane axis.  Single fused VPU expression.
    o_ref[...] = x_ref[...] * m_ref[...] + s_ref[...]


def _pick_row_tile(rows, lanes, itemsize, target_bytes=2 << 20):
    """Largest row tile giving ~target_bytes per input block, (8,128)-legal."""
    rows_per_block = max(1, target_bytes // (lanes * itemsize))
    if rows_per_block >= rows:
        return rows                      # full dim -> always legal
    rows_per_block = max(8, (rows_per_block // 8) * 8)   # multiple of 8
    return min(rows_per_block, rows)


def denormalize(x, mean, std):
    """x: (N, C, H, W); mean, std: (C,).  Returns x * mean[c] + std[c]."""
    N, C, H, W = x.shape
    assert mean.shape == (C,) and std.shape == (C,)

    rows, lanes = N * C, H * W
    itemsize = jnp.dtype(x.dtype).itemsize

    # Lane-dense 2D view (free reshape for contiguous NCHW).
    x2 = x.reshape(rows, lanes)
    # Per-row parameter columns (one scalar per (n, c) row).
    m_col = jnp.tile(mean.astype(x.dtype), N).reshape(rows, 1)
    s_col = jnp.tile(std.astype(x.dtype), N).reshape(rows, 1)

    r_tile = _pick_row_tile(rows, lanes, itemsize)
    grid = (pl.cdiv(rows, r_tile),)

    out2 = pl.pallas_call(
        _denorm_kernel,
        out_shape=jax.ShapeDtypeStruct((rows, lanes), x.dtype),
        grid_spec=pltpu.PrefetchScalarGridSpec(
            num_scalar_prefetch=0,
            grid=grid,
            in_specs=[
                pl.BlockSpec((r_tile, lanes), lambda i: (i, 0)),
                pl.BlockSpec((r_tile, 1), lambda i: (i, 0)),
                pl.BlockSpec((r_tile, 1), lambda i: (i, 0)),
            ],
            out_specs=pl.BlockSpec((r_tile, lanes), lambda i: (i, 0)),
        ),
        compiler_params=pltpu.CompilerParams(
            dimension_semantics=("parallel",)),
        cost_estimate=pl.CostEstimate(
            flops=2 * x.size,
            transcendentals=0,
            bytes_accessed=2 * x.size * itemsize),
    )(x2, m_col, s_col)

    return out2.reshape(N, C, H, W)


if __name__ == "__main__":
    key = jax.random.PRNGKey(0)

    # Small NCHW input consistent with the module (C must be 3 to match mean/std).
    N, C, H, W = 2, 3, 16, 16
    x = jax.random.normal(key, (N, C, H, W), dtype=jnp.float32)

    # The module's default mean/std constants.
    mean = jnp.array([0.485, 0.456, 0.406], dtype=jnp.float32)
    std = jnp.array([0.229, 0.224, 0.225], dtype=jnp.float32)

    y = denormalize(x, mean, std)
    jax.block_until_ready(y)

    # Pure-JAX reference (same broadcasting semantics as the PyTorch view()).
    y_ref = x * mean.reshape(1, C, 1, 1) + std.reshape(1, C, 1, 1)
    assert y.shape == x.shape and y.dtype == x.dtype
    assert jnp.allclose(y, y_ref, atol=1e-6, rtol=1e-6)

    print("KERNEL_OK")
</pallas_src>

<mosaic_0001>
module attributes {stable_mosaic.version = 11 : i64} {
  func.func @_denorm_kernel(%arg0: i32, %arg1: memref<6x256xf32, #tpu.memory_space<vmem>>, %arg2: memref<6x1xf32, #tpu.memory_space<vmem>>, %arg3: memref<6x1xf32, #tpu.memory_space<vmem>>, %arg4: memref<6x256xf32, #tpu.memory_space<vmem>>) attributes {dimension_semantics = [#tpu.dimension_semantics<parallel>], iteration_bounds = array<i64: 1>, scalar_prefetch = 0 : i64, scratch_operands = 0 : i64, tpu.core_type = #tpu.core_type<tc>, window_params = [{transform_indices = @transform_0, window_bounds = array<i64: 6, 256>}, {transform_indices = @transform_1, window_bounds = array<i64: 6, 1>}, {transform_indices = @transform_2, window_bounds = array<i64: 6, 1>}, {transform_indices = @transform_3, window_bounds = array<i64: 6, 256>}]} {
    %c0 = arith.constant 0 : index
    %c0_0 = arith.constant 0 : index
    %0 = vector.load %arg1[%c0, %c0_0] : memref<6x256xf32, #tpu.memory_space<vmem>>, vector<6x256xf32>
    %c0_1 = arith.constant 0 : index
    %c0_2 = arith.constant 0 : index
    %1 = vector.load %arg2[%c0_1, %c0_2] : memref<6x1xf32, #tpu.memory_space<vmem>>, vector<6x1xf32>
    %2 = vector.broadcast %1 : vector<6x1xf32> to vector<6x256xf32>
    %3 = arith.mulf %0, %2 : vector<6x256xf32>
    %c0_3 = arith.constant 0 : index
    %c0_4 = arith.constant 0 : index
    %4 = vector.load %arg3[%c0_3, %c0_4] : memref<6x1xf32, #tpu.memory_space<vmem>>, vector<6x1xf32>
    %5 = vector.broadcast %4 : vector<6x1xf32> to vector<6x256xf32>
    %6 = arith.addf %3, %5 : vector<6x256xf32>
    %c0_5 = arith.constant 0 : index
    %c0_6 = arith.constant 0 : index
    %7 = vector.load %arg4[%c0_5, %c0_6] : memref<6x256xf32, #tpu.memory_space<vmem>>, vector<6x256xf32>
    tpu.vector_store %arg4[%c0_5, %c0_6], %6 {strides = array<i32>} : memref<6x256xf32, #tpu.memory_space<vmem>>, vector<6x256xf32>,
    return
  }
  func.func @transform_0(%arg0: i32) -> (i32, i32) {
    %c0_i32 = arith.constant 0 : i32
    %c0_i32_0 = arith.constant 0 : i32
    return %arg0, %c0_i32 : i32, i32
  }
  func.func @transform_1(%arg0: i32) -> (i32, i32) {
    %c0_i32 = arith.constant 0 : i32
    %c0_i32_0 = arith.constant 0 : i32
    return %arg0, %c0_i32 : i32, i32
  }
  func.func @transform_2(%arg0: i32) -> (i32, i32) {
    %c0_i32 = arith.constant 0 : i32
    %c0_i32_0 = arith.constant 0 : i32
    return %arg0, %c0_i32 : i32, i32
  }
  func.func @transform_3(%arg0: i32) -> (i32, i32) {
    %c0_i32 = arith.constant 0 : i32
    %c0_i32_0 = arith.constant 0 : i32
    return %arg0, %c0_i32 : i32, i32
  }
}

</mosaic_0001>

<bundles_post_ra>
// kernel: tpu_custom_call.1
= control target key start
LH: loop header
LB: loop body
LE: loop exit
PB: predicated region body
PF: predicated region fallthrough
CT: control target
= control target key end

     0   :  { %v80_v1 = vmov 0   ;;  %s117_s0 = inlined_call_operand.vmem [shape: f32[6,256], index: 0, kind: input, shape index: {}]   ;;  %s118_s1 = inlined_call_operand.vmem [shape: f32[6,1], index: 1, kind: input, shape index: {}]   ;;  %s119_s2 = inlined_call_operand.vmem [shape: f32[6,1], index: 2, kind: input, shape index: {}]   ;;  %s120_s3 = inlined_call_operand.hbm [shape: f32[6,256], index: 3, kind: output, shape index: {}]  }
   0x1   :  { %v17_v0 = vld [vmem:[%s118_s1] sm:$0x3f]  ;;  %53 = vset.pattern.permute.xlu0 %v80_v1 }
   0x2   :  { %8 = vsyncpa [#allocation3], 0  ;;  %20 = vperm.xlu0 %53, %v17_v0   ;;  %v25_v2 = vld [vmem:[%s119_s2] sm:$0x3f]  ;;  %v16_v5 = vld [vmem:[%s117_s0 + $0x8] sm:$0x3f] }
   0x3   :  { %v15_v4 = vld [vmem:[%s117_s0] sm:$0x3f]  ;;  %s81_s1 = smov [#allocation2]   ;;  %s42_s23 = sshll.u32 %s120_s3, 4  ;;  %s43_s23 = int_to_ptr.hbm [resolvable:$true] %s42_s23 }
   0x4   :  { %s40_s20 = sshll.u32 %s81_s1, 4  ;;  %s41_s20 = int_to_ptr.vmem [resolvable:$true] %s40_s20 }
   0xa   :  { %28 = vperm.xlu0 %53, %v25_v2  }
  0x74   :  { %v21_v3 = vpop.permute.xlu0 %20 }
  0x75   :  { %v23_v6 = vmul.f32 %v21_v3, %v15_v4  ;;  %v24_v7 = vmul.f32 %v21_v3, %v16_v5 }
  0x7c   :  { %v29_v8 = vpop.permute.xlu0 %28 }
  0x7d   :  { %v31_v9 = vadd.f32 %v29_v8, %v23_v6  ;;  %v32_v10 = vadd.f32 %v29_v8, %v24_v7 }
  0x7f   :  { %33 = vst [vmem:[#allocation2] sm:$0x3f] %v31_v9 }
  0x80   :  { %34 = vst [vmem:[#allocation2 + $0x8] sm:$0x3f] %v32_v10 }
  0x81   :  { %45 = dma.vmem_to_hbm [thread:$0]  %s41_s20, 256, %s43_s23, [#allocation3]  }
  0x82   :  { %78 = dma.done.wait [#allocation3], 256  }
  0x83   :  { %79 = vsyncadd [#allocation3], 4294967040 }
  0x84   :  { %50 = vsyncpa [#allocation3], 1 }

</bundles_post_ra>
